<compile_context>
chip_gen: v5e
topology: v5e:2x2
jax: 0.10.0
libtpu: 0.0.40
codegen_flags: <defaults>
</compile_context>

<pallas_src>
import functools

import jax
import jax.numpy as jnp
from jax.experimental import pallas as pl
from jax.experimental.pallas import tpu as pltpu


def _round_up(n: int, m: int) -> int:
    return ((n + m - 1) // m) * m


def _residual_linear_kernel(x_ref, w_ref, b_ref, o_ref):
    """out = x @ W + b + x for one (TILE_M, D) row tile. W, b are resident."""
    x = x_ref[...]                      # (TILE_M, D) in input dtype
    w = w_ref[...]                      # (D, D) resident (f32 or bf16)
    # Match MXU operand dtype to the (possibly bf16) weight; accumulate f32.
    x_mxu = x if x.dtype == w.dtype else x.astype(w.dtype)
    y = jnp.dot(x_mxu, w, preferred_element_type=jnp.float32)
    # Bias + residual add in f32, single cast at the store.
    y = y + b_ref[...].astype(jnp.float32) + x.astype(jnp.float32)
    o_ref[...] = y.astype(o_ref.dtype)


def _pick_tile_m(n: int, d_pad: int, x_bytes: int, w_bytes: int,
                 vmem_budget: int) -> int:
    """Largest multiple-of-8 row tile whose double-buffered traffic fits VMEM."""
    n8 = _round_up(max(n, 8), 8)
    # Resident cost: W + b (single-buffered, constant index_map).
    resident = d_pad * d_pad * w_bytes + d_pad * 4
    # Per-tile cost: x tile (in dtype) + out tile (in dtype) + f32 temporaries,
    # each effectively double-buffered by the pipeline.
    per_row = d_pad * (2 * x_bytes + 4)
    avail = max(vmem_budget - resident, 8 * 2 * per_row)
    tile_m = avail // (2 * per_row)
    tile_m = max(8, min(_round_up(min(tile_m, 512), 8) - 0, 512))
    tile_m = (tile_m // 8) * 8
    tile_m = max(8, min(tile_m, n8))
    return tile_m


@functools.partial(jax.jit, static_argnames=("use_bf16_mxu",))
def residual_linear(x2d, w, b, *, use_bf16_mxu: bool = False):
    """Fused Linear(x) + x.

    x2d: [N, D]  (rows = flattened batch*seq, features last -> lane axis)
    w:   [D, D]  (input-dim first, output-dim last; no transpose in-kernel)
    b:   [1, D]
    """
    N, D = x2d.shape
    assert w.shape == (D, D) and b.shape == (1, D)

    # --- lane-dense / tile-aligned padding (zeros preserve semantics) -----
    d_pad = max(128, _round_up(D, 128))
    x_bytes = x2d.dtype.itemsize
    w_bytes = 2 if use_bf16_mxu else w.dtype.itemsize
    vmem_budget = 24 << 20                      # conservative (v7x has 64 MiB)
    tile_m = _pick_tile_m(N, d_pad, x_bytes, w_bytes, vmem_budget)
    n_pad = _round_up(N, tile_m)

    xp = x2d if (n_pad == N and d_pad == D) else jnp.pad(
        x2d, ((0, n_pad - N), (0, d_pad - D)))
    wp = w if d_pad == D else jnp.pad(w, ((0, d_pad - D), (0, d_pad - D)))
    bp = b if d_pad == D else jnp.pad(b, ((0, 0), (0, d_pad - D)))
    if use_bf16_mxu:
        # Halves HBM traffic for the resident weight; accumulation stays f32.
        wp = wp.astype(jnp.bfloat16)

    grid = (n_pad // tile_m,)

    cost = pl.CostEstimate(
        flops=2 * n_pad * d_pad * d_pad,
        transcendentals=0,
        bytes_accessed=int(xp.size * xp.dtype.itemsize
                           + wp.size * wp.dtype.itemsize
                           + bp.size * bp.dtype.itemsize
                           + n_pad * d_pad * x2d.dtype.itemsize),
    )

    out = pl.pallas_call(
        _residual_linear_kernel,
        out_shape=jax.ShapeDtypeStruct((n_pad, d_pad), x2d.dtype),
        grid=grid,
        in_specs=[
            pl.BlockSpec((tile_m, d_pad), lambda i: (i, 0)),  # x (streamed)
            pl.BlockSpec((d_pad, d_pad), lambda i: (0, 0)),   # W (resident)
            pl.BlockSpec((1, d_pad), lambda i: (0, 0)),       # b (resident)
        ],
        out_specs=pl.BlockSpec((tile_m, d_pad), lambda i: (i, 0)),
        compiler_params=pltpu.CompilerParams(
            dimension_semantics=("parallel",),
            vmem_limit_bytes=vmem_budget + (8 << 20),
        ),
        cost_estimate=cost,
    )(xp, wp, bp)

    if n_pad == N and d_pad == D:
        return out
    return out[:N, :D]


class Residual:
    """JAX mirror of the PyTorch Residual wrapper: forward(x) = fn(x) + x.

    `fn` here is a Linear(D, D) fused into the Pallas kernel together with
    the residual add.
    """

    def __init__(self, w, b, *, use_bf16_mxu: bool = False):
        self.w = w
        self.b = b
        self.use_bf16_mxu = use_bf16_mxu

    def __call__(self, x):
        orig_shape = x.shape
        D = orig_shape[-1]
        x2d = x.reshape(-1, D)
        out = residual_linear(x2d, self.w, self.b,
                              use_bf16_mxu=self.use_bf16_mxu)
        return out.reshape(orig_shape)


if __name__ == "__main__":
    key = jax.random.PRNGKey(0)
    B, S, D = 2, 8, 32          # small demo shapes: batch=2, seq=8, hidden=32

    kx, kw, kb = jax.random.split(key, 3)
    x = jax.random.normal(kx, (B, S, D), dtype=jnp.float32)
    # Deterministic "parameters" for fn = Linear(D, D)
    w = jax.random.normal(kw, (D, D), dtype=jnp.float32) * 0.05
    b = jax.random.normal(kb, (1, D), dtype=jnp.float32) * 0.01

    # Pure-JAX reference: fn(x) + x
    ref = (jnp.einsum("bsd,de->bse", x, w) + b[0]) + x

    # f32 MXU path (exact-precision check)
    model = Residual(w, b, use_bf16_mxu=False)
    out = jax.block_until_ready(model(x))
    assert out.shape == x.shape
    assert jnp.allclose(out, ref, atol=1e-4, rtol=1e-4)

    # bf16 MXU-operand path (v6e/v7x throughput path) — loose tolerance
    model_bf16 = Residual(w, b, use_bf16_mxu=True)
    out_bf16 = jax.block_until_ready(model_bf16(x))
    assert out_bf16.shape == x.shape
    assert jnp.allclose(out_bf16, ref, atol=5e-2, rtol=5e-2)

    print("KERNEL_OK")
</pallas_src>

<mosaic_0001>
module attributes {stable_mosaic.version = 11 : i64} {
  func.func @_residual_linear_kernel(%arg0: i32, %arg1: memref<16x128xf32, #tpu.memory_space<vmem>>, %arg2: memref<128x128xf32, #tpu.memory_space<vmem>>, %arg3: memref<1x128xf32, #tpu.memory_space<vmem>>, %arg4: memref<16x128xf32, #tpu.memory_space<vmem>>) attributes {dimension_semantics = [#tpu.dimension_semantics<parallel>], iteration_bounds = array<i64: 1>, scalar_prefetch = 0 : i64, scratch_operands = 0 : i64, tpu.core_type = #tpu.core_type<tc>, window_params = [{transform_indices = @transform_0, window_bounds = array<i64: 16, 128>}, {pipeline_mode = #tpu.pipeline_mode<synchronous>, transform_indices = @transform_1, window_bounds = array<i64: 128, 128>}, {pipeline_mode = #tpu.pipeline_mode<synchronous>, transform_indices = @transform_2, window_bounds = array<i64: 1, 128>}, {transform_indices = @transform_3, window_bounds = array<i64: 16, 128>}]} {
    %c0 = arith.constant 0 : index
    %c0_0 = arith.constant 0 : index
    %0 = vector.load %arg1[%c0, %c0_0] : memref<16x128xf32, #tpu.memory_space<vmem>>, vector<16x128xf32>
    %c0_1 = arith.constant 0 : index
    %c0_2 = arith.constant 0 : index
    %1 = vector.load %arg2[%c0_1, %c0_2] : memref<128x128xf32, #tpu.memory_space<vmem>>, vector<128x128xf32>
    %cst = arith.constant dense<0.000000e+00> : vector<16x128xf32>
    %2 = tpu.matmul %0, %1, %cst {dimension_numbers = #tpu.dot_dimension_numbers<[1], [0], [0], [1], [0, 0, 1, 1], [], []>} : vector<16x128xf32>, vector<128x128xf32>, vector<16x128xf32> -> vector<16x128xf32>
    %c0_3 = arith.constant 0 : index
    %c0_4 = arith.constant 0 : index
    %3 = vector.load %arg3[%c0_3, %c0_4] : memref<1x128xf32, #tpu.memory_space<vmem>>, vector<1x128xf32>
    %4 = vector.broadcast %3 : vector<1x128xf32> to vector<16x128xf32>
    %5 = arith.addf %2, %4 : vector<16x128xf32>
    %6 = arith.addf %5, %0 : vector<16x128xf32>
    %c0_5 = arith.constant 0 : index
    %c0_6 = arith.constant 0 : index
    %7 = vector.load %arg4[%c0_5, %c0_6] : memref<16x128xf32, #tpu.memory_space<vmem>>, vector<16x128xf32>
    tpu.vector_store %arg4[%c0_5, %c0_6], %6 {strides = array<i32>} : memref<16x128xf32, #tpu.memory_space<vmem>>, vector<16x128xf32>,
    return
  }
  func.func @transform_0(%arg0: i32) -> (i32, i32) {
    %c0_i32 = arith.constant 0 : i32
    %c0_i32_0 = arith.constant 0 : i32
    return %arg0, %c0_i32 : i32, i32
  }
  func.func @transform_1(%arg0: i32) -> (i32, i32) {
    %c0_i32 = arith.constant 0 : i32
    %c0_i32_0 = arith.constant 0 : i32
    %c0_i32_1 = arith.constant 0 : i32
    return %c0_i32, %c0_i32_0 : i32, i32
  }
  func.func @transform_2(%arg0: i32) -> (i32, i32) {
    %c0_i32 = arith.constant 0 : i32
    %c0_i32_0 = arith.constant 0 : i32
    %c0_i32_1 = arith.constant 0 : i32
    return %c0_i32, %c0_i32_0 : i32, i32
  }
  func.func @transform_3(%arg0: i32) -> (i32, i32) {
    %c0_i32 = arith.constant 0 : i32
    %c0_i32_0 = arith.constant 0 : i32
    return %arg0, %c0_i32 : i32, i32
  }
}

</mosaic_0001>

<bundles_post_ra>
// kernel: residual_linear.1
= control target key start
LH: loop header
LB: loop body
LE: loop exit
PB: predicated region body
PF: predicated region fallthrough
CT: control target
= control target key end

     0   :  { %s211_s0 = inlined_call_operand.vmem [shape: f32[16,128], index: 0, kind: input, shape index: {}]   ;;  %s212_s1 = inlined_call_operand.vmem [shape: f32[128,128], index: 1, kind: input, shape index: {}]   ;;  %s213_s2 = inlined_call_operand.vmem [shape: f32[1,128], index: 2, kind: input, shape index: {}]   ;;  %s214_s3 = inlined_call_operand.hbm [shape: f32[16,128], index: 3, kind: output, shape index: {}]  }
   0x1   :  { %v32_v0 = vld [vmem:[%s212_s1 + $0x78] sm:$0xff]  ;;  %v31_v1 = vld [vmem:[%s212_s1 + $0x70] sm:$0xff]  ;;  %v30_v2 = vld [vmem:[%s212_s1 + $0x68] sm:$0xff] }
   0x2   :  { %37 = vmatpush.msra.mxu0 %v32_v0  ;;  %82 = vmatpush.msra.mxu1 %v32_v0  ;;  %v29_v3 = vld [vmem:[%s212_s1 + $0x60] sm:$0xff]  ;;  %v28_v4 = vld [vmem:[%s212_s1 + $0x58] sm:$0xff] }
   0x4   :  { %38 = vmatpush.msra.mxu0 %v31_v1  ;;  %83 = vmatpush.msra.mxu1 %v31_v1 }
   0x6   :  { %39 = vmatpush.msra.mxu0 %v30_v2  ;;  %84 = vmatpush.msra.mxu1 %v30_v2 }
   0x7   :  { %8 = vsyncpa [#allocation3], 0  ;;  %v27_v5 = vld [vmem:[%s212_s1 + $0x50] sm:$0xff]  ;;  %v26_v6 = vld [vmem:[%s212_s1 + $0x48] sm:$0xff]  ;;  %s70_s26 = sshll.u32 %s214_s3, 4  ;;  %s130_s27 = smov 8   ;;  %s71_s26 = int_to_ptr.hbm [resolvable:$true] %s70_s26 }
   0x8   :  { %40 = vmatpush.msra.mxu0 %v29_v3  ;;  %85 = vmatpush.msra.mxu1 %v29_v3  ;;  %v25_v7 = vld [vmem:[%s212_s1 + $0x40] sm:$0xff]  ;;  %v24_v8 = vld [vmem:[%s212_s1 + $0x38] sm:$0xff]  ;;  %v23_v9 = vld [vmem:[%s212_s1 + $0x30] sm:$0xff] }
   0x9   :  { %v22_v10 = vld [vmem:[%s212_s1 + $0x28] sm:$0xff]  ;;  %v21_v11 = vld [vmem:[%s212_s1 + $0x20] sm:$0xff]  ;;  %v20_v12 = vld [vmem:[%s212_s1 + $0x18] sm:$0xff] }
   0xa   :  { %41 = vmatpush.msra.mxu0 %v28_v4  ;;  %86 = vmatpush.msra.mxu1 %v28_v4  ;;  %v19_v13 = vld [vmem:[%s212_s1 + $0x10] sm:$0xff]  ;;  %v18_v14 = vld [vmem:[%s212_s1 + $0x8] sm:$0xff]  ;;  %v17_v15 = vld [vmem:[%s212_s1] sm:$0xff]  ;;  %s128_s1 = smov [#allocation2]  }
   0xb   :  { %v15_v16 = vld [vmem:[%s211_s0] sm:$0xff]  ;;  %v16_v17 = vld [vmem:[%s211_s0 + $0x8] sm:$0xff]  ;;  %s68_s23 = sshll.u32 %s128_s1, 4  ;;  %s129_s0 = smov 128   ;;  %s69_s23 = int_to_ptr.vmem [resolvable:$true] %s68_s23 }
   0xc   :  { %42 = vmatpush.msra.mxu0 %v27_v5  ;;  %87 = vmatpush.msra.mxu1 %v27_v5  ;;  %v101_v18 = vld [vmem:[%s213_s2] ss:$0 sm:$0xff] }
   0xe   :  { %43 = vmatpush.msra.mxu0 %v26_v6  ;;  %88 = vmatpush.msra.mxu1 %v26_v6 }
  0x10   :  { %44 = vmatpush.msra.mxu0 %v25_v7  ;;  %89 = vmatpush.msra.mxu1 %v25_v7 }
  0x12   :  { %45 = vmatpush.msra.mxu0 %v24_v8  ;;  %90 = vmatpush.msra.mxu1 %v24_v8 }
  0x14   :  { %46 = vmatpush.msra.mxu0 %v23_v9  ;;  %91 = vmatpush.msra.mxu1 %v23_v9 }
  0x16   :  { %47 = vmatpush.msra.mxu0 %v22_v10  ;;  %92 = vmatpush.msra.mxu1 %v22_v10 }
  0x18   :  { %48 = vmatpush.msra.mxu0 %v21_v11  ;;  %93 = vmatpush.msra.mxu1 %v21_v11 }
  0x1a   :  { %49 = vmatpush.msra.mxu0 %v20_v12  ;;  %94 = vmatpush.msra.mxu1 %v20_v12 }
  0x1c   :  { %50 = vmatpush.msra.mxu0 %v19_v13  ;;  %95 = vmatpush.msra.mxu1 %v19_v13 }
  0x1e   :  { %51 = vmatpush.msra.mxu0 %v18_v14  ;;  %96 = vmatpush.msra.mxu1 %v18_v14 }
  0x20   :  { %52 = vmatpush.msra.mxu0 %v17_v15  ;;  %97 = vmatpush.msra.mxu1 %v17_v15 }
  0x21   :  { %53 = vmatmul.f32.vlgmr.msra.gmra.mxu0 %v15_v16  ;;  %56 = vmatmul.f32.vlgmr.msra.gmra.mxu1 %v16_v17 }
  0x9e   :  { %v54_v19 = vpop.f32.mrf.mxu0  ;;  %v57_v20 = vpop.f32.mrf.mxu1 }
  0x9f   :  { %v55_v21 = vadd.f32 %v101_v18, %v54_v19  ;;  %v58_v22 = vadd.f32 %v101_v18, %v57_v20 }
  0xa1   :  { %v60_v23 = vadd.f32 %v55_v21, %v15_v16  ;;  %v61_v24 = vadd.f32 %v58_v22, %v16_v17 }
  0xa3   :  { %62 = vst [vmem:[#allocation2] sm:$0xff] %v60_v23 }
  0xa4   :  { %63 = vst [vmem:[#allocation2 + $0x8] sm:$0xff] %v61_v24 }
  0xa5   :  { %76 = dma.vmem_to_hbm [thread:$0]  %s69_s23, 256, %s71_s26, [#allocation3], %s129_s0, %s129_s0, %s130_s27  }
  0xa6   :  { %126 = dma.done.wait [#allocation3], 256  }
  0xa7   :  { %127 = vsyncadd [#allocation3], 4294967040 }
  0xa8   :  { %81 = vsyncpa [#allocation3], 1 }

</bundles_post_ra>
